<compile_context>
chip_gen: v7x
topology: tpu7x:2x2x1
jax: 0.10.0
libtpu: 0.0.40
codegen_flags: <defaults>
</compile_context>

<pallas_src>
import jax
import jax.numpy as jnp
from jax.experimental import pallas as pl
from jax.experimental.pallas import tpu as pltpu


# ---------------------------------------------------------------------------
# Static layer dimensions (match the PyTorch module defaults).
# ---------------------------------------------------------------------------
IN_FEAT, H1, H2, H3, OUT_FEAT = 4, 12, 12, 7, 3
OUT_PAD = 8     # output lane width (full last dim of the out array)
LANES = 128     # lane width of the packed parameter slab


def _round_up(n, m):
    return ((n + m - 1) // m) * m


# Row layout of the packed parameter slab (rows x 128 lanes, f32).
# Every tensor starts on an 8-sublane boundary -> cheap, aligned ref slices.
R_W1 = 0        # rows  0..3   (4 x 12)
R_B1 = 8        # row   8      (1 x 12)
R_W2 = 16       # rows 16..27  (12 x 12)
R_B2 = 32       # row  32      (1 x 12)
R_W3 = 40       # rows 40..51  (12 x 7)
R_B3 = 56       # row  56      (1 x 7)
R_W4 = 64       # rows 64..70  (7 x 8, cols >=3 zero)
R_B4 = 72       # row  72      (1 x 8, cols >=3 zero)
PARAM_ROWS = 80


# ---------------------------------------------------------------------------
# Kernel: one batch tile, all four layers fused.
# ---------------------------------------------------------------------------
def mlp_kernel(x_ref, p_ref, o_ref):
    x = x_ref[...]                                    # (TM, 4)

    w1 = p_ref[R_W1:R_W1 + IN_FEAT, :H1]              # (4, 12)
    b1 = p_ref[R_B1:R_B1 + 1, :H1]                    # (1, 12)
    w2 = p_ref[R_W2:R_W2 + H1, :H2]                   # (12, 12)
    b2 = p_ref[R_B2:R_B2 + 1, :H2]                    # (1, 12)
    w3 = p_ref[R_W3:R_W3 + H2, :H3]                   # (12, 7)
    b3 = p_ref[R_B3:R_B3 + 1, :H3]                    # (1, 7)
    w4 = p_ref[R_W4:R_W4 + H3, :OUT_PAD]              # (7, 8)  (cols >=3 zero)
    b4 = p_ref[R_B4:R_B4 + 1, :OUT_PAD]               # (1, 8)

    h = jnp.dot(x, w1, preferred_element_type=jnp.float32) + b1
    h = jnp.maximum(h, 0.0)
    h = jnp.dot(h, w2, preferred_element_type=jnp.float32) + b2
    h = jnp.maximum(h, 0.0)
    h = jnp.dot(h, w3, preferred_element_type=jnp.float32) + b3
    h = jnp.maximum(h, 0.0)
    out = jnp.dot(h, w4, preferred_element_type=jnp.float32) + b4  # (TM, 8)
    o_ref[...] = out.astype(o_ref.dtype)


# ---------------------------------------------------------------------------
# Parameter packing: 8 tensors -> one (80, 128) zero-padded slab (1 DMA).
# Weights are stored transposed to (in, out); biases as (1, out).
# ---------------------------------------------------------------------------
def pack_params(p):
    slab = jnp.zeros((PARAM_ROWS, LANES), dtype=jnp.float32)
    slab = slab.at[R_W1:R_W1 + IN_FEAT, :H1].set(p["w1"])
    slab = slab.at[R_B1:R_B1 + 1, :H1].set(p["b1"])
    slab = slab.at[R_W2:R_W2 + H1, :H2].set(p["w2"])
    slab = slab.at[R_B2:R_B2 + 1, :H2].set(p["b2"])
    slab = slab.at[R_W3:R_W3 + H2, :H3].set(p["w3"])
    slab = slab.at[R_B3:R_B3 + 1, :H3].set(p["b3"])
    slab = slab.at[R_W4:R_W4 + H3, :OUT_FEAT].set(p["w4"])
    slab = slab.at[R_B4:R_B4 + 1, :OUT_FEAT].set(p["b4"])
    return slab


# ---------------------------------------------------------------------------
# Wrapper: batch-tiled grid, resident params, narrow (8-lane) output.
# ---------------------------------------------------------------------------
def mlp_forward(x, packed_params, tm_max=8192):
    B, in_feat = x.shape
    assert in_feat == IN_FEAT

    # Batch tile: multiple of 8 sublanes, large enough to amortize per-step
    # overhead, capped by tm_max (VMEM budget), and clamped to ceil(B/2) so
    # mid/large batches always yield >= 2 grid steps (v7x megacore sharding).
    TM = min(tm_max, max(8, _round_up(pl.cdiv(B, 2), 8)))
    grid = (pl.cdiv(B, TM),)

    # ~4-5 KiB of VMEM per tile row (double-buffered lane-padded x/out blocks
    # plus lane-padded intermediates), with headroom; cap well under v7x's
    # 64 MiB per TensorCore, above v5e's 16 MiB default scoped limit.
    vmem_limit = min(max(TM * 5 * 1024 + (4 << 20), 32 << 20), 56 << 20)

    out_padded = pl.pallas_call(
        mlp_kernel,
        out_shape=jax.ShapeDtypeStruct((B, OUT_PAD), jnp.float32),
        grid=grid,
        in_specs=[
            pl.BlockSpec((TM, IN_FEAT), lambda i: (i, 0)),          # streamed x tiles
            pl.BlockSpec((PARAM_ROWS, LANES), lambda i: (0, 0)),    # resident params
        ],
        out_specs=pl.BlockSpec((TM, OUT_PAD), lambda i: (i, 0)),    # narrow out slab
        compiler_params=pltpu.CompilerParams(
            dimension_semantics=("parallel",),
            vmem_limit_bytes=int(vmem_limit),
        ),
    )(x, packed_params)

    return out_padded[:, :OUT_FEAT]


# ---------------------------------------------------------------------------
# Deterministic synthetic init (PyTorch-Linear-like uniform fan_in scaling).
# Weights stored transposed to (in, out); biases as (1, out).
# ---------------------------------------------------------------------------
def init_params(key):
    dims = [(IN_FEAT, H1), (H1, H2), (H2, H3), (H3, OUT_FEAT)]
    params = {}
    keys = jax.random.split(key, 2 * len(dims))
    for i, (fan_in, fan_out) in enumerate(dims):
        bound = 1.0 / (fan_in ** 0.5)
        w = jax.random.uniform(keys[2 * i], (fan_in, fan_out),
                               minval=-bound, maxval=bound, dtype=jnp.float32)
        b = jax.random.uniform(keys[2 * i + 1], (1, fan_out),
                               minval=-bound, maxval=bound, dtype=jnp.float32)
        params[f"w{i + 1}"] = w
        params[f"b{i + 1}"] = b
    return params


def mlp_ref(x, p):
    """Pure-JAX reference for correctness check."""
    h = jnp.maximum(x @ p["w1"] + p["b1"], 0.0)
    h = jnp.maximum(h @ p["w2"] + p["b2"], 0.0)
    h = jnp.maximum(h @ p["w3"] + p["b3"], 0.0)
    return h @ p["w4"] + p["b4"]


if __name__ == "__main__":
    key = jax.random.PRNGKey(0)
    k_x, k_p = jax.random.split(key)

    params = init_params(k_p)
    packed = pack_params(params)

    # Case 1: small single-tile batch.
    x1 = jax.random.normal(k_x, (8, IN_FEAT), dtype=jnp.float32)
    out1 = jax.block_until_ready(mlp_forward(x1, packed))
    ref1 = mlp_ref(x1, params)
    assert out1.shape == (8, OUT_FEAT), out1.shape
    assert jnp.allclose(out1, ref1, atol=1e-5, rtol=1e-5), "mismatch (B=8)"

    # Case 2: multi-tile batch, not a multiple of the tile (edge-block path).
    x2 = jax.random.normal(jax.random.PRNGKey(1), (37, IN_FEAT), dtype=jnp.float32)
    out2 = jax.block_until_ready(mlp_forward(x2, packed, tm_max=16))
    ref2 = mlp_ref(x2, params)
    assert out2.shape == (37, OUT_FEAT), out2.shape
    assert jnp.allclose(out2, ref2, atol=1e-5, rtol=1e-5), "mismatch (B=37, edge block)"

    print("KERNEL_OK")
</pallas_src>

<mosaic_0001>
module attributes {stable_mosaic.version = 11 : i64} {
  func.func @mlp_kernel(%arg0: i32, %arg1: memref<8x4xf32, #tpu.memory_space<vmem>>, %arg2: memref<80x128xf32, #tpu.memory_space<vmem>>, %arg3: memref<8x8xf32, #tpu.memory_space<vmem>>) attributes {dimension_semantics = [#tpu.dimension_semantics<parallel>], iteration_bounds = array<i64: 1>, scalar_prefetch = 0 : i64, scratch_operands = 0 : i64, tpu.core_type = #tpu.core_type<tc>, window_params = [{transform_indices = @transform_0, window_bounds = array<i64: 8, 4>}, {pipeline_mode = #tpu.pipeline_mode<synchronous>, transform_indices = @transform_1, window_bounds = array<i64: 80, 128>}, {transform_indices = @transform_2, window_bounds = array<i64: 8, 8>}]} {
    %c0 = arith.constant 0 : index
    %c0_0 = arith.constant 0 : index
    %0 = vector.load %arg1[%c0, %c0_0] : memref<8x4xf32, #tpu.memory_space<vmem>>, vector<8x4xf32>
    %c0_1 = arith.constant 0 : index
    %c0_2 = arith.constant 0 : index
    %1 = vector.load %arg2[%c0_1, %c0_2] : memref<80x128xf32, #tpu.memory_space<vmem>>, vector<4x12xf32>
    %c8 = arith.constant 8 : index
    %c0_3 = arith.constant 0 : index
    %2 = vector.load %arg2[%c8, %c0_3] : memref<80x128xf32, #tpu.memory_space<vmem>>, vector<1x12xf32>
    %c16 = arith.constant 16 : index
    %c0_4 = arith.constant 0 : index
    %3 = vector.load %arg2[%c16, %c0_4] : memref<80x128xf32, #tpu.memory_space<vmem>>, vector<12x12xf32>
    %c32 = arith.constant 32 : index
    %c0_5 = arith.constant 0 : index
    %4 = vector.load %arg2[%c32, %c0_5] : memref<80x128xf32, #tpu.memory_space<vmem>>, vector<1x12xf32>
    %c40 = arith.constant 40 : index
    %c0_6 = arith.constant 0 : index
    %5 = vector.load %arg2[%c40, %c0_6] : memref<80x128xf32, #tpu.memory_space<vmem>>, vector<12x7xf32>
    %c56 = arith.constant 56 : index
    %c0_7 = arith.constant 0 : index
    %6 = vector.load %arg2[%c56, %c0_7] : memref<80x128xf32, #tpu.memory_space<vmem>>, vector<1x7xf32>
    %c64 = arith.constant 64 : index
    %c0_8 = arith.constant 0 : index
    %7 = vector.load %arg2[%c64, %c0_8] : memref<80x128xf32, #tpu.memory_space<vmem>>, vector<7x8xf32>
    %c72 = arith.constant 72 : index
    %c0_9 = arith.constant 0 : index
    %8 = vector.load %arg2[%c72, %c0_9] : memref<80x128xf32, #tpu.memory_space<vmem>>, vector<1x8xf32>
    %cst = arith.constant dense<0.000000e+00> : vector<8x12xf32>
    %9 = tpu.matmul %0, %1, %cst {dimension_numbers = #tpu.dot_dimension_numbers<[1], [0], [0], [1], [0, 0, 1, 1], [], []>} : vector<8x4xf32>, vector<4x12xf32>, vector<8x12xf32> -> vector<8x12xf32>
    %10 = vector.broadcast %2 : vector<1x12xf32> to vector<8x12xf32>
    %11 = arith.addf %9, %10 : vector<8x12xf32>
    %cst_10 = arith.constant 0.000000e+00 : f32
    %12 = vector.broadcast %cst_10 : f32 to vector<8x12xf32>
    %13 = arith.maximumf %11, %12 : vector<8x12xf32>
    %cst_11 = arith.constant dense<0.000000e+00> : vector<8x12xf32>
    %14 = tpu.matmul %13, %3, %cst_11 {dimension_numbers = #tpu.dot_dimension_numbers<[1], [0], [0], [1], [0, 0, 1, 1], [], []>} : vector<8x12xf32>, vector<12x12xf32>, vector<8x12xf32> -> vector<8x12xf32>
    %15 = vector.broadcast %4 : vector<1x12xf32> to vector<8x12xf32>
    %16 = arith.addf %14, %15 : vector<8x12xf32>
    %cst_12 = arith.constant 0.000000e+00 : f32
    %17 = vector.broadcast %cst_12 : f32 to vector<8x12xf32>
    %18 = arith.maximumf %16, %17 : vector<8x12xf32>
    %cst_13 = arith.constant dense<0.000000e+00> : vector<8x7xf32>
    %19 = tpu.matmul %18, %5, %cst_13 {dimension_numbers = #tpu.dot_dimension_numbers<[1], [0], [0], [1], [0, 0, 1, 1], [], []>} : vector<8x12xf32>, vector<12x7xf32>, vector<8x7xf32> -> vector<8x7xf32>
    %20 = vector.broadcast %6 : vector<1x7xf32> to vector<8x7xf32>
    %21 = arith.addf %19, %20 : vector<8x7xf32>
    %cst_14 = arith.constant 0.000000e+00 : f32
    %22 = vector.broadcast %cst_14 : f32 to vector<8x7xf32>
    %23 = arith.maximumf %21, %22 : vector<8x7xf32>
    %cst_15 = arith.constant dense<0.000000e+00> : vector<8x8xf32>
    %24 = tpu.matmul %23, %7, %cst_15 {dimension_numbers = #tpu.dot_dimension_numbers<[1], [0], [0], [1], [0, 0, 1, 1], [], []>} : vector<8x7xf32>, vector<7x8xf32>, vector<8x8xf32> -> vector<8x8xf32>
    %25 = vector.broadcast %8 : vector<1x8xf32> to vector<8x8xf32>
    %26 = arith.addf %24, %25 : vector<8x8xf32>
    %c0_16 = arith.constant 0 : index
    %c0_17 = arith.constant 0 : index
    %27 = vector.load %arg3[%c0_16, %c0_17] : memref<8x8xf32, #tpu.memory_space<vmem>>, vector<8x8xf32>
    tpu.vector_store %arg3[%c0_16, %c0_17], %26 {strides = array<i32>} : memref<8x8xf32, #tpu.memory_space<vmem>>, vector<8x8xf32>,
    return
  }
  func.func @transform_0(%arg0: i32) -> (i32, i32) {
    %c0_i32 = arith.constant 0 : i32
    %c0_i32_0 = arith.constant 0 : i32
    return %arg0, %c0_i32 : i32, i32
  }
  func.func @transform_1(%arg0: i32) -> (i32, i32) {
    %c0_i32 = arith.constant 0 : i32
    %c0_i32_0 = arith.constant 0 : i32
    %c0_i32_1 = arith.constant 0 : i32
    return %c0_i32, %c0_i32_0 : i32, i32
  }
  func.func @transform_2(%arg0: i32) -> (i32, i32) {
    %c0_i32 = arith.constant 0 : i32
    %c0_i32_0 = arith.constant 0 : i32
    return %arg0, %c0_i32 : i32, i32
  }
}

</mosaic_0001>

<bundles_post_ra>
// kernel: tpu_custom_call.1
= control target key start
LH: loop header
LB: loop body
LE: loop exit
PB: predicated region body
PF: predicated region fallthrough
CT: control target
= control target key end

     0   :  { %7 = vsyncpa [#allocation3], 0  ;;  %s546_s0 = inlined_call_operand.vmem [shape: f32[8,4], index: 0, kind: input, shape index: {}]   ;;  %s547_s1 = inlined_call_operand.hbm [shape: f32[80,128], index: 1, kind: input, shape index: {}]   ;;  %s548_s2 = inlined_call_operand.hbm [shape: f32[8,8], index: 2, kind: output, shape index: {}]  }
   0x1   :  { %8 = vsyncpa [#allocation4], 0  ;;  %s492_s9 = smov [#allocation2]   ;;  %s444_s13 = scalar_lea.hbm %s547_s1, 1280 }
   0x2   :  { %s16_s10 = sshll.u32 %s492_s9, 4  ;;  %p445_p0 = scmp.ne.s32.totalorder %s547_s1, %s444_s13  ;;  %s17_s10 = int_to_ptr.vmem [resolvable:$true] %s16_s10 }
   0x3   :  { %p448_p1 = scmp.lt.u32.totalorder %s444_s13, %s547_s1 }
   0x5   :  { %p450_p2 = pnand %p448_p1, %p445_p0 }
   0x7   :  { %453 = shalt.err (!%p450_p2)
}
   0x8   :  { %s454_s18 = scalar_lea.vmem %s17_s10, 1280  ;;  %p459_p4 = scmp.lt.s32.totalorder %s17_s10, %s17_s10 }
   0x9   :  { %p455_p3 = scmp.ne.s32.totalorder %s17_s10, %s454_s18  ;;  %p460_p5 = scmp.lt.s32.totalorder %s454_s18, %s454_s18 }
   0xb   :  { %p461_p6 = por %p460_p5, %p459_p4 }
   0xd   :  { %p462_p7 = pnand %p461_p6, %p455_p3 }
   0xf   :  { %465 = shalt.err (!%p462_p7)
}
  0x10   :  { %s493_s19 = smov 128   ;;  %s494_s20 = smov 8  }
  0x11   :  { %22 = dma.hbm_to_vmem [thread:$0]  %s547_s1, 1280, %s17_s10, [#allocation3], %s493_s19, %s493_s19, %s494_s20  }
  0x12   :  { %488 = dma.done.wait [#allocation3], 1280  }
  0x13   :  { %489 = vsyncadd [#allocation3], 4294966016  ;;  %v495_v0 = vmov 0.0   ;;  %vm496_vm0 = vmmov 0   ;;  %vm45_vm1 = vcmask 1043456   ;;  %vm41_vm2 = vcmask 31744  }
  0x14   :  { %404 = vmatprep.subr.mxu0 %v495_v0  ;;  %406 = vmatprep.mubr.msk.f32.mxu0 %vm496_vm0, %v495_v0  ;;  %v27_v1 = vld [vmem:[#allocation2] sm:$0xf]  ;;  %v29_v3 = vld [vmem:[#allocation2 + $0x10] sm:$0xff]  ;;  %v30_v4 = vld [vmem:[#allocation2 + $0x18] sm:$0xf]  ;;  %v497_v6 = vmov 0.0|0.0  }
  0x15   :  { %413 = vmatprep.mubr.msk.f32.mxu1 %vm496_vm0, %v495_v0  ;;  %v26_v2 = vld [vmem:[%s546_s0] sm:$0xff]  ;;  %405 = vmatpush3.msk.msra.mxu0 %vm45_vm1, %v27_v1  ;;  %v429_v5 = vpack.c.bf16 %v30_v4, %v29_v3  ;;  %vm498_vm3 = vmmov 1   ;;  %v382_v7 = vld [vmem:[#allocation2 + $0x8] ss:$0 sm:$0xff]  ;;  %vm124_vm5 = vcmask 97280   ;;  %vm291_vm6 = vcmask 1046528  }
  0x16   :  { %407 = vmatmul.mubr.msk.f32.vlgmr.msra.gmra.mrb[0].mxu0 %vm41_vm2, %v26_v2  ;;  %428 = vmatprep.subr.bf16.mxu1 %v497_v6  ;;  %vm430_vm4 = vmpackc.low %vm45_vm1, %vm498_vm3  ;;  %v32_v12 = vld [vmem:[#allocation2 + $0x28] sm:$0xff]  ;;  %v33_v13 = vld [vmem:[#allocation2 + $0x30] sm:$0xf]  ;;  %vm287_vm7 = vcmask 56320   ;;  %s499_s0 = smov [#allocation5]   ;;  %vm365_vm8 = vcmask 64512  }
  0x17   :  { %420 = vmatprep.mubr.msk.f32.mxu0 %vm496_vm0, %v495_v0  ;;  %432 = vmatprep.subr.bf16.mxu0 %v497_v6  ;;  %v433_v14 = vpack.c.bf16 %v33_v13, %v32_v12  ;;  %v385_v15 = vld [vmem:[#allocation2 + $0x20] ss:$0 sm:$0xff]  ;;  %v388_v21 = vld [vmem:[#allocation2 + $0x38] ss:$0 sm:$0xff]  ;;  %v391_v26 = vld [vmem:[#allocation2 + $0x48] ss:$0 sm:$0xff] }
  0x18   :  { %431 = vmatpush3.bf16.msk.msra.mxu1 %vm430_vm4, %v429_v5  ;;  %v35_v20 = vld [vmem:[#allocation2 + $0x40] sm:$0x7f]  ;;  %s373_s1 = sshll.u32 %s499_s0, 4  ;;  %s374_s1 = int_to_ptr.vmem [resolvable:$true] %s373_s1 }
  0x19   :  { %423 = vmatprep.subr.mxu1 %v495_v0  ;;  %435 = vmatpush3.bf16.msk.msra.mxu0 %vm430_vm4, %v433_v14  ;;  %s466_s25 = scalar_lea.vmem %s374_s1, 128  ;;  %p471_p9 = scmp.lt.s32.totalorder %s374_s1, %s374_s1 }
  0x1a   :  { %p467_p8 = scmp.ne.s32.totalorder %s374_s1, %s466_s25  ;;  %p472_p10 = scmp.lt.s32.totalorder %s466_s25, %s466_s25 }
  0x1c   :  { %p473_p11 = por %p472_p10, %p471_p9 }
  0x1e   :  { %p474_p12 = pnand %p473_p11, %p467_p8 }
  0xe9   :  { %v115_v8 = vpop.f32.mrb[0].mxu0 }
  0xea   :  { %v116_v9 = vadd.f32 %v382_v7, %v115_v8  ;;  %v408_v10 = vpop.f32.mrb[1].mxu0 }
  0xec   :  { %v119_v11 = vmax.f32 %v116_v9, 0.0 }
  0xee   :  { %414 = vmatmul.mubr.msk.f32.vlgmr.msra.gmra.mrb[0].mxu1 %vm124_vm5, %v119_v11 }
  0xef   :  { %425 = vmatprep.mubr.msk.f32.mxu1 %vm496_vm0, %v495_v0  ;;  %424 = vmatpush3.msk.msra.mxu1 %vm291_vm6, %v35_v20 }
 0x1c1   :  { %v197_v16 = vpop.f32.mrb[0].mxu1 }
 0x1c2   :  { %v198_v17 = vadd.f32 %v385_v15, %v197_v16  ;;  %v415_v18 = vpop.f32.mrb[1].mxu1 }
 0x1c4   :  { %v201_v19 = vmax.f32 %v198_v17, 0.0 }
 0x1c6   :  { %421 = vmatmul.mubr.msk.f32.vlgmr.msra.gmra.mrb[2].mxu0 %vm124_vm5, %v201_v19 }
 0x299   :  { %v278_v22 = vpop.f32.mrb[2].mxu0 }
 0x29a   :  { %v279_v23 = vadd.f32 %v388_v21, %v278_v22  ;;  %v422_v24 = vpop.f32.mrb[3].mxu0 }
 0x29c   :  { %v282_v25 = vmax.f32 %v279_v23, 0.0 }
 0x29e   :  { %426 = vmatmul.mubr.msk.f32.vlgmr.msra.gmra.mrb[2].mxu1 %vm287_vm7, %v282_v25 }
 0x371   :  { %v361_v27 = vpop.f32.mrb[2].mxu1 }
 0x372   :  { %v362_v28 = vadd.f32 %v391_v26, %v361_v27  ;;  %v427_v29 = vpop.f32.mrb[3].mxu1 }
 0x374   :  { %366 = vst.msk [vmem:[#allocation5] sm:$0xff] %vm365_vm8, %v362_v28 }
 0x375   :  { %477 = shalt.err (!%p474_p12)
}
 0x376   :  { %s478_s28 = scalar_lea.hbm %s548_s2, 128 }
 0x377   :  { %p479_p13 = scmp.ne.s32.totalorder %s548_s2, %s478_s28  ;;  %p482_p0 = scmp.lt.u32.totalorder %s478_s28, %s548_s2 }
 0x379   :  { %p484_p1 = pnand %p482_p0, %p479_p13 }
 0x37b   :  { %487 = shalt.err (!%p484_p1)
}
 0x37c   :  { %376 = dma.vmem_to_hbm [thread:$0]  %s374_s1, 128, %s548_s2, [#allocation4]  }
 0x37d   :  { %490 = dma.done.wait [#allocation4], 128  }
 0x37e   :  { %491 = vsyncadd [#allocation4], 4294967168 }
 0x37f   :  { %380 = vsyncpa [#allocation3], 1 }
 0x380   :  { %381 = vsyncpa [#allocation4], 1 }

</bundles_post_ra>
